<compile_context>
chip_gen: v6e
topology: v6e:2x2x1
jax: 0.10.0
libtpu: 0.0.40
codegen_flags: <defaults>
</compile_context>

<pallas_src>
import jax
import jax.numpy as jnp
from jax import lax
from jax.experimental import pallas as pl
from jax.experimental.pallas import tpu as pltpu


def _round_up(v, m):
    return -(-v // m) * m


# ----------------------------------------------------------------------------
# Pallas kernel 1: row-tiled linear + ReLU node encoder (synthetic base_model core)
# ----------------------------------------------------------------------------
def _linear_relu_kernel(x_ref, w_ref, b_ref, o_ref):
    h = jnp.dot(x_ref[...], w_ref[...], preferred_element_type=jnp.float32)
    h = h + b_ref[...]
    o_ref[...] = jnp.maximum(h, 0.0).astype(o_ref.dtype)


def linear_relu(x, w, b, *, tile_n=256):
    n, f = x.shape
    c = w.shape[1]
    tile = min(tile_n, _round_up(n, 8))
    n_pad = _round_up(n, tile)
    x_p = x if n_pad == n else jnp.pad(x, ((0, n_pad - n), (0, 0)))
    out = pl.pallas_call(
        _linear_relu_kernel,
        out_shape=jax.ShapeDtypeStruct((n_pad, c), x.dtype),
        grid=(n_pad // tile,),
        in_specs=[
            pl.BlockSpec((tile, f), lambda i: (i, 0)),   # row tile of x
            pl.BlockSpec((f, c), lambda i: (0, 0)),      # weights resident
            pl.BlockSpec((1, c), lambda i: (0, 0)),      # bias resident
        ],
        out_specs=pl.BlockSpec((tile, c), lambda i: (i, 0)),
        compiler_params=pltpu.CompilerParams(dimension_semantics=("parallel",)),
    )(x_p, w, b.reshape(1, c))
    return out[:n]


# ----------------------------------------------------------------------------
# Pallas kernel 2: fused edge-weight extractor MLP with in-kernel row gather
#   PyG nn.MLP([2C, 4C, 1], dropout=p) in eval mode:
#     Linear(2C,4C) -> BatchNorm1d(4C) (folded into the linear) -> ReLU
#     -> Dropout(identity) -> Linear(4C,1)   then .relu() from get_weight()
#   Gather of emb[col] / emb[row] and the (virtual) concat happen inside the
#   kernel:  h = emb[col] @ w1a + emb[row] @ w1b  (== concat([f1,f2]) @ w1).
# ----------------------------------------------------------------------------
def _edge_mlp_kernel(col_ref, row_ref, emb_ref, w1a_ref, w1b_ref,
                     b1_ref, w2_ref, b2_ref, o_ref):
    n_nodes = emb_ref.shape[0]
    tile_e = col_ref.shape[0]
    emb = emb_ref[...]                                           # (N, C) resident, mm dtype

    # One-hot MXU gather of emb rows (robust in-kernel dynamic gather).
    # TODO(synk): for large N (emb not VMEM-resident / one-hot flops too big),
    # replace with a paged manual-DMA gather scheme; budget against v7x 64 MiB VMEM.
    node_iota = lax.broadcasted_iota(jnp.int32, (tile_e, n_nodes), 1)
    oh1 = (col_ref[...] == node_iota).astype(jnp.float32).astype(emb.dtype)
    oh2 = (row_ref[...] == node_iota).astype(jnp.float32).astype(emb.dtype)
    f1 = jnp.dot(oh1, emb)                                       # (tile_e, C) == emb[col]
    f2 = jnp.dot(oh2, emb)                                       # (tile_e, C) == emb[row]

    # Layer 1 (BatchNorm already folded into w1a/w1b/b1), f32 accumulation.
    h = jnp.dot(f1, w1a_ref[...], preferred_element_type=jnp.float32)
    h = h + jnp.dot(f2, w1b_ref[...], preferred_element_type=jnp.float32)
    h = h + b1_ref[...]
    h = jnp.maximum(h, 0.0)
    # TODO(synk): dropout omitted (identity in eval mode; no RNG state here).

    # Layer 2 + final .relu() from get_weight().
    y = jnp.dot(h.astype(w2_ref.dtype), w2_ref[...], preferred_element_type=jnp.float32)
    y = y + b2_ref[...]
    o_ref[...] = jnp.maximum(y, 0.0).astype(o_ref.dtype)


def edge_mlp(col, row, emb, w1a, w1b, b1_eff, w2, b2, *,
             tile_e=512, mm_dtype=jnp.bfloat16):
    e = col.shape[0]
    n_nodes, c = emb.shape
    c4 = w1a.shape[1]

    tile = min(tile_e, _round_up(e, 128))          # 128-aligned; shrink for tiny E
    e_pad = _round_up(e, tile)
    pad = e_pad - e
    col_p = jnp.pad(col.astype(jnp.int32), (0, pad)).reshape(e_pad, 1)
    row_p = jnp.pad(row.astype(jnp.int32), (0, pad)).reshape(e_pad, 1)

    out = pl.pallas_call(
        _edge_mlp_kernel,
        out_shape=jax.ShapeDtypeStruct((e_pad, 1), jnp.float32),
        grid=(e_pad // tile,),
        in_specs=[
            pl.BlockSpec((tile, 1), lambda i: (i, 0)),         # col indices (per tile)
            pl.BlockSpec((tile, 1), lambda i: (i, 0)),         # row indices (per tile)
            pl.BlockSpec((n_nodes, c), lambda i: (0, 0)),      # emb, VMEM-resident
            pl.BlockSpec((c, c4), lambda i: (0, 0)),           # w1a (BN-folded)
            pl.BlockSpec((c, c4), lambda i: (0, 0)),           # w1b (BN-folded)
            pl.BlockSpec((1, c4), lambda i: (0, 0)),           # b1 (BN-folded, f32)
            pl.BlockSpec((c4, 1), lambda i: (0, 0)),           # w2
            pl.BlockSpec((1, 1), lambda i: (0, 0)),            # b2 (f32)
        ],
        out_specs=pl.BlockSpec((tile, 1), lambda i: (i, 0)),
        compiler_params=pltpu.CompilerParams(dimension_semantics=("parallel",)),
    )(
        col_p,
        row_p,
        emb.astype(mm_dtype),
        w1a.astype(mm_dtype),
        w1b.astype(mm_dtype),
        b1_eff.reshape(1, c4).astype(jnp.float32),
        w2.astype(mm_dtype),
        b2.reshape(1, 1).astype(jnp.float32),
    )
    return out[:e]


# ----------------------------------------------------------------------------
# Synthetic base_model (the real one is an externally injected GNN)
# ----------------------------------------------------------------------------
class SyntheticGCNBase:
    # TODO(synk): the real `base_model` is supplied from outside the module; this
    # is a minimal GNN stand-in: Pallas linear+ReLU node encoder followed by an
    # (edge-weighted) neighbor sum-aggregation kept as JAX glue (the data-dependent
    # scatter-add has no clean Pallas equivalent here).
    def __init__(self, w, b):
        self.w = w
        self.b = b

    def __call__(self, x, edge_index, edge_weight=None):
        h = linear_relu(x, self.w, self.b)              # [N, C]  (Pallas, row-tiled)
        col, row = edge_index[0], edge_index[1]
        n_edges = edge_index.shape[1]
        if edge_weight is None:
            ew = jnp.ones((n_edges,), x.dtype)
        else:
            ew = edge_weight.reshape(-1).astype(x.dtype)
        msgs = h[col] * ew[:, None]                     # gather + scale (glue)
        agg = jnp.zeros_like(h).at[row].add(msgs)       # scatter-add aggregation
        return h + agg


# ----------------------------------------------------------------------------
# Edge_Weight_MLP
# ----------------------------------------------------------------------------
class EdgeWeightMLP:
    def __init__(self, base_model, extractor_params, *, tile_e=512, mm_dtype=jnp.bfloat16):
        self.base_model = base_model
        w1, b1, bn_scale, bn_shift, w2, b2 = extractor_params
        c2, _ = w1.shape
        c = c2 // 2
        # Fold inference BatchNorm into the first linear (exact: BN is pre-ReLU).
        w1_eff = w1 * bn_scale[None, :]
        b1_eff = b1 * bn_scale + bn_shift
        # Split first-layer weight so the concat([f1, f2]) never materializes.
        self.w1a = w1_eff[:c].astype(mm_dtype)
        self.w1b = w1_eff[c:].astype(mm_dtype)
        self.b1_eff = b1_eff.astype(jnp.float32)
        self.w2 = w2.astype(mm_dtype)
        self.b2 = b2.astype(jnp.float32)
        self.tile_e = tile_e
        self.mm_dtype = mm_dtype

    def get_weight(self, x, edge_index):
        emb = self.base_model(x, edge_index)            # emb = base_model(x, edge_index)
        col, row = edge_index[0], edge_index[1]
        return edge_mlp(col, row, emb, self.w1a, self.w1b, self.b1_eff,
                        self.w2, self.b2, tile_e=self.tile_e, mm_dtype=self.mm_dtype)

    def __call__(self, x, edge_index, edge_weight=None):
        if edge_weight is None:
            edge_weight = self.get_weight(x, edge_index)
        logist = self.base_model(x, edge_index, edge_weight)
        return logist


# ----------------------------------------------------------------------------
# Deterministic parameter init + demo
# ----------------------------------------------------------------------------
def init_params(key, f_in, out_channels):
    c = out_channels
    c2, c4 = 2 * c, 4 * c
    k = jax.random.split(key, 5)
    # synthetic base_model encoder
    w_base = jax.random.normal(k[0], (f_in, c), jnp.float32) * (1.0 / jnp.sqrt(f_in))
    b_base = jnp.zeros((c,), jnp.float32)
    # extractor MLP([2C, 4C, 1])
    w1 = jax.random.normal(k[1], (c2, c4), jnp.float32) * (1.0 / jnp.sqrt(c2))
    b1 = jax.random.normal(k[2], (c4,), jnp.float32) * 0.01
    w2 = jax.random.normal(k[3], (c4, 1), jnp.float32) * (1.0 / jnp.sqrt(c4))
    b2 = jax.random.normal(k[4], (1,), jnp.float32) * 0.01
    # BatchNorm1d(4C) default init + running stats, folded to affine (inference)
    eps = 1e-5
    gamma = jnp.ones((c4,), jnp.float32)
    beta = jnp.zeros((c4,), jnp.float32)
    run_mean = jnp.zeros((c4,), jnp.float32)
    run_var = jnp.ones((c4,), jnp.float32)
    bn_scale = gamma / jnp.sqrt(run_var + eps)
    bn_shift = beta - run_mean * bn_scale
    return (w_base, b_base), (w1, b1, bn_scale, bn_shift, w2, b2)


if __name__ == "__main__":
    key = jax.random.PRNGKey(0)
    k_x, k_e, k_p = jax.random.split(key, 3)

    N = 16            # number of nodes
    F_IN = 8          # raw node-feature dim
    C = 32            # out_channels of base_model
    E = 64            # number of edges

    x = jax.random.normal(k_x, (N, F_IN), jnp.float32)
    edge_index = jax.random.randint(k_e, (2, E), 0, N, dtype=jnp.int32)

    base_params, extractor_params = init_params(k_p, F_IN, C)
    base_model = SyntheticGCNBase(*base_params)
    model = EdgeWeightMLP(base_model, extractor_params)

    # path 1: edge_weight computed by the fused Pallas extractor, then base_model
    logits = jax.block_until_ready(model(x, edge_index))

    # also exercise get_weight directly (the Pallas hot path)
    ew = jax.block_until_ready(model.get_weight(x, edge_index))

    assert logits.shape == (N, C)
    assert ew.shape == (E, 1)
    assert bool(jnp.all(ew >= 0.0))          # final relu

    # pure-JAX f32 reference for the extractor path (tolerance covers bf16 matmuls)
    w_base, b_base = base_params
    w1, b1, bn_scale, bn_shift, w2, b2 = extractor_params
    h_ref = jnp.maximum(x @ w_base + b_base, 0.0)
    col_r, row_r = edge_index[0], edge_index[1]
    agg = jnp.zeros_like(h_ref).at[row_r].add(h_ref[col_r])
    emb_ref = h_ref + agg
    f12 = jnp.concatenate([emb_ref[col_r], emb_ref[row_r]], axis=-1)
    hid = jnp.maximum((f12 @ w1 + b1) * bn_scale + bn_shift, 0.0)
    ew_ref = jnp.maximum(hid @ w2 + b2, 0.0)
    assert bool(jnp.allclose(ew, ew_ref, rtol=1e-1, atol=2e-1))

    print("KERNEL_OK")
</pallas_src>

<mosaic_0001>
module attributes {stable_mosaic.version = 11 : i64} {
  func.func @_linear_relu_kernel(%arg0: i32, %arg1: memref<16x8xf32, #tpu.memory_space<vmem>>, %arg2: memref<8x32xf32, #tpu.memory_space<vmem>>, %arg3: memref<1x32xf32, #tpu.memory_space<vmem>>, %arg4: memref<16x32xf32, #tpu.memory_space<vmem>>) attributes {dimension_semantics = [#tpu.dimension_semantics<parallel>], iteration_bounds = array<i64: 1>, scalar_prefetch = 0 : i64, scratch_operands = 0 : i64, tpu.core_type = #tpu.core_type<tc>, window_params = [{transform_indices = @transform_0, window_bounds = array<i64: 16, 8>}, {pipeline_mode = #tpu.pipeline_mode<synchronous>, transform_indices = @transform_1, window_bounds = array<i64: 8, 32>}, {pipeline_mode = #tpu.pipeline_mode<synchronous>, transform_indices = @transform_2, window_bounds = array<i64: 1, 32>}, {transform_indices = @transform_3, window_bounds = array<i64: 16, 32>}]} {
    %c0 = arith.constant 0 : index
    %c0_0 = arith.constant 0 : index
    %0 = vector.load %arg1[%c0, %c0_0] : memref<16x8xf32, #tpu.memory_space<vmem>>, vector<16x8xf32>
    %c0_1 = arith.constant 0 : index
    %c0_2 = arith.constant 0 : index
    %1 = vector.load %arg2[%c0_1, %c0_2] : memref<8x32xf32, #tpu.memory_space<vmem>>, vector<8x32xf32>
    %cst = arith.constant dense<0.000000e+00> : vector<16x32xf32>
    %2 = tpu.matmul %0, %1, %cst {dimension_numbers = #tpu.dot_dimension_numbers<[1], [0], [0], [1], [0, 0, 1, 1], [], []>} : vector<16x8xf32>, vector<8x32xf32>, vector<16x32xf32> -> vector<16x32xf32>
    %c0_3 = arith.constant 0 : index
    %c0_4 = arith.constant 0 : index
    %3 = vector.load %arg3[%c0_3, %c0_4] : memref<1x32xf32, #tpu.memory_space<vmem>>, vector<1x32xf32>
    %4 = vector.broadcast %3 : vector<1x32xf32> to vector<16x32xf32>
    %5 = arith.addf %2, %4 : vector<16x32xf32>
    %cst_5 = arith.constant 0.000000e+00 : f32
    %6 = vector.broadcast %cst_5 : f32 to vector<16x32xf32>
    %7 = arith.maximumf %5, %6 : vector<16x32xf32>
    %c0_6 = arith.constant 0 : index
    %c0_7 = arith.constant 0 : index
    %8 = vector.load %arg4[%c0_6, %c0_7] : memref<16x32xf32, #tpu.memory_space<vmem>>, vector<16x32xf32>
    tpu.vector_store %arg4[%c0_6, %c0_7], %7 {strides = array<i32>} : memref<16x32xf32, #tpu.memory_space<vmem>>, vector<16x32xf32>,
    return
  }
  func.func @transform_0(%arg0: i32) -> (i32, i32) {
    %c0_i32 = arith.constant 0 : i32
    %c0_i32_0 = arith.constant 0 : i32
    return %arg0, %c0_i32 : i32, i32
  }
  func.func @transform_1(%arg0: i32) -> (i32, i32) {
    %c0_i32 = arith.constant 0 : i32
    %c0_i32_0 = arith.constant 0 : i32
    %c0_i32_1 = arith.constant 0 : i32
    return %c0_i32, %c0_i32_0 : i32, i32
  }
  func.func @transform_2(%arg0: i32) -> (i32, i32) {
    %c0_i32 = arith.constant 0 : i32
    %c0_i32_0 = arith.constant 0 : i32
    %c0_i32_1 = arith.constant 0 : i32
    return %c0_i32, %c0_i32_0 : i32, i32
  }
  func.func @transform_3(%arg0: i32) -> (i32, i32) {
    %c0_i32 = arith.constant 0 : i32
    %c0_i32_0 = arith.constant 0 : i32
    return %arg0, %c0_i32 : i32, i32
  }
}

</mosaic_0001>

<bundles_post_ra>
// kernel: tpu_custom_call.1
= control target key start
LH: loop header
LB: loop body
LE: loop exit
PB: predicated region body
PF: predicated region fallthrough
CT: control target
= control target key end

     0   :  { %vm25_vm0 = vcmask 64512   ;;  %s202_s0 = inlined_call_operand.vmem [shape: f32[16,8], index: 0, kind: input, shape index: {}]   ;;  %s203_s1 = inlined_call_operand.vmem [shape: f32[8,32], index: 1, kind: input, shape index: {}]   ;;  %s204_s2 = inlined_call_operand.vmem [shape: f32[1,32], index: 2, kind: input, shape index: {}]   ;;  %s205_s3 = inlined_call_operand.hbm [shape: f32[16,32], index: 3, kind: output, shape index: {}]  }
   0x1   :  { %v17_v0 = vld [vmem:[%s203_s1] sm:$0xff]  ;;  %v16_v2 = vld [vmem:[%s202_s0 + $0x8] sm:$0xff] }
   0x2   :  { %v15_v1 = vld [vmem:[%s202_s0] sm:$0xff]  ;;  %134 = vmatprep.subr.mxu0 %v17_v0 }
   0x3   :  { %136 = vmatprep.mubr.msk.f32.mxu0 %vm25_vm0, %v15_v1 }
   0x4   :  { %8 = vsyncpa [#allocation3], 0  ;;  %135 = vmatpush3.msra.mxu0 %v17_v0  ;;  %v128_v3 = vld [vmem:[%s204_s2] ss:$0 sm:$0xff]  ;;  %s164_s1 = smov [#allocation2]   ;;  %vm109_vm1 = vcmask 261120  }
   0x5   :  { %137 = vmatmul.mubr.msk.f32.vlgmr.msra.gmra.mxu0 %vm25_vm0, %v16_v2  ;;  %s117_s20 = sshll.u32 %s164_s1, 4  ;;  %s118_s20 = int_to_ptr.vmem [resolvable:$true] %s117_s20 }
   0x6   :  { %s142_s0 = scalar_lea.vmem %s118_s20, 256  ;;  %p147_p1 = scmp.lt.s32.totalorder %s118_s20, %s118_s20 }
   0x7   :  { %p143_p0 = scmp.ne.s32.totalorder %s118_s20, %s142_s0  ;;  %p148_p2 = scmp.lt.s32.totalorder %s142_s0, %s142_s0 }
   0x9   :  { %p149_p3 = por %p148_p2, %p147_p1 }
   0xb   :  { %p150_p4 = pnand %p149_p3, %p143_p0 }
  0xc5   :  { %v138_v4 = vpop.f32.mrf.mxu0 }
  0xc6   :  { %v104_v5 = vadd.f32 %v138_v4, %v128_v3 }
  0xc7   :  { %v98_v6 = vpop.f32.mrf.mxu0 }
  0xc8   :  { %v108_v7 = vmax.f32 %v104_v5, 0.0  ;;  %v99_v8 = vadd.f32 %v128_v3, %v98_v6 }
  0xca   :  { %111 = vst.msk [vmem:[#allocation2 + $0x8] sm:$0xff] %vm109_vm1, %v108_v7  ;;  %v107_v9 = vmax.f32 %v99_v8, 0.0 }
  0xcc   :  { %110 = vst.msk [vmem:[#allocation2] sm:$0xff] %vm109_vm1, %v107_v9 }
  0xcd   :  { %153 = shalt.err (!%p150_p4)
}
  0xce   :  { %s165_s2 = smov 128   ;;  %s166_s21 = smov 8  }
  0xcf   :  { %123 = dma.vmem_to_hbm [thread:$0]  %s118_s20, 256, %s205_s3, [#allocation3], %s165_s2, %s165_s2, %s166_s21  }
  0xd0   :  { %162 = dma.done.wait [#allocation3], 256  }
  0xd1   :  { %163 = vsyncadd [#allocation3], 4294967040 }
  0xd2   :  { %127 = vsyncpa [#allocation3], 1 }

</bundles_post_ra>
